<compile_context>
chip_gen: v5e
topology: v5e:2x2
jax: 0.10.0
libtpu: 0.0.40
codegen_flags: <defaults>
</compile_context>

<pallas_src>
import functools

import jax
import jax.numpy as jnp
from jax.experimental import pallas as pl
from jax.experimental.pallas import tpu as pltpu


def _make_kernel(num_layers, seq_len, batch_pad, hidden_size):
    """Kernel body for fixed (num_layers, seq_len, padded batch, hidden_size)."""
    # Layer 0 weights: w_ih split into (career, token) parts + w_hh + fused bias.
    # Layers >0: w_ih + w_hh + fused bias.
    n_w = 4 + 3 * (num_layers - 1)
    n_in = 3 + n_w + 2  # ce, tok, h0, weights..., w_out_pad, b_out_pad

    def kernel(*refs):
        ce_ref, tok_ref, h0_ref = refs[0], refs[1], refs[2]
        w_refs = refs[3:3 + n_w]
        wout_ref = refs[3 + n_w]
        bout_ref = refs[4 + n_w]
        out_ref = refs[n_in]
        hn_ref = refs[n_in + 1]
        seq_ref = refs[n_in + 2]  # (T*Bp, H) f32 scratch: last layer's sequence

        # --- per-layer weights, read & cast once (bf16 MXU operands) ---
        w_ce = w_refs[0][...].astype(jnp.bfloat16)    # (V, H)
        w_tok = w_refs[1][...].astype(jnp.bfloat16)   # (H, H)
        w_hh = [w_refs[2][...].astype(jnp.bfloat16)]  # (H, H)
        bias = [w_refs[3][...].astype(jnp.float32)]   # (1, H) fused b_ih + b_hh
        w_ih = [None]
        idx = 4
        for _ in range(1, num_layers):
            w_ih.append(w_refs[idx][...].astype(jnp.bfloat16)); idx += 1
            w_hh.append(w_refs[idx][...].astype(jnp.bfloat16)); idx += 1
            bias.append(w_refs[idx][...].astype(jnp.float32)); idx += 1

        # Broadcast hoisted out of the time loop (JAX doesn't CSE broadcast_in_dim).
        bias_b = [jnp.broadcast_to(b, (batch_pad, hidden_size)) for b in bias]

        # --- layer-0 input projection hoisted & batched over all T steps ---
        pre0 = (
            jnp.dot(ce_ref[...].astype(jnp.bfloat16), w_ce,
                    preferred_element_type=jnp.float32)
            + jnp.dot(tok_ref[...].astype(jnp.bfloat16), w_tok,
                      preferred_element_type=jnp.float32)
            + bias[0]
        )  # (T*Bp, H) f32, time-major

        h = [h0_ref[l].astype(jnp.float32) for l in range(num_layers)]  # (Bp, H) each
        last = num_layers - 1

        # --- wavefront schedule: stage s runs layer l's timestep t = s - l ---
        # Every update at stage s reads only state from stage s-1 (h_old), so
        # the serial matmul->tanh chain is T + L - 1 stages instead of L*T.
        for s in range(seq_len + num_layers - 1):
            h_old = list(h)
            for l in range(num_layers):
                t = s - l
                if 0 <= t < seq_len:
                    if l == 0:
                        x_proj = pre0[t * batch_pad:(t + 1) * batch_pad, :]
                    else:
                        # Off the critical chain (depends only on stage s-1 state).
                        x_proj = (
                            jnp.dot(h_old[l - 1].astype(jnp.bfloat16), w_ih[l],
                                    preferred_element_type=jnp.float32)
                            + bias_b[l]
                        )
                    h[l] = jnp.tanh(
                        x_proj
                        + jnp.dot(h_old[l].astype(jnp.bfloat16), w_hh[l],
                                  preferred_element_type=jnp.float32)
                    )
                    if l == last:
                        # Sublane-aligned store (batch_pad multiple of 8).
                        seq_ref[t * batch_pad:(t + 1) * batch_pad, :] = h[l]

        for l in range(num_layers):
            hn_ref[l] = h[l].astype(hn_ref.dtype)

        # TODO(synk): lstm_dropout is identity (eval/inference mode).
        # --- lane-dense output Linear: (T*Bp, H) @ (H, Vp) + b (unmasked vst) ---
        out_ref[...] = (
            jnp.dot(seq_ref[...].astype(jnp.bfloat16),
                    wout_ref[...].astype(jnp.bfloat16),
                    preferred_element_type=jnp.float32)
            + bout_ref[...].astype(jnp.float32)
        ).astype(out_ref.dtype)

    return kernel


def init_params(key, vector_size, hidden_size, num_layers, dtype=jnp.float32):
    """Deterministic init mirroring torch.nn.RNN / Linear default U(-1/sqrt(H), 1/sqrt(H))."""
    bound = 1.0 / jnp.sqrt(jnp.array(hidden_size, dtype))
    layers = []
    for layer in range(num_layers):
        in_size = (vector_size + hidden_size) if layer == 0 else hidden_size
        key, k1, k2, k3, k4 = jax.random.split(key, 5)
        w_ih = jax.random.uniform(k1, (in_size, hidden_size), dtype, -bound, bound)
        w_hh = jax.random.uniform(k2, (hidden_size, hidden_size), dtype, -bound, bound)
        b_ih = jax.random.uniform(k3, (1, hidden_size), dtype, -bound, bound)
        b_hh = jax.random.uniform(k4, (1, hidden_size), dtype, -bound, bound)
        layers.append((w_ih, w_hh, b_ih, b_hh))
    key, k5, k6 = jax.random.split(key, 3)
    w_out = jax.random.uniform(k5, (hidden_size, vector_size), dtype, -bound, bound)
    b_out = jax.random.uniform(k6, (1, vector_size), dtype, -bound, bound)
    return {"layers": layers, "w_out": w_out, "b_out": b_out}


@functools.partial(jax.jit, static_argnames=("num_layers",))
def career_decoder_forward(career_embedding, hidden_state, token, params, *, num_layers):
    batch, seq_len, vector_size = career_embedding.shape
    hidden_size = token.shape[2]
    dtype = career_embedding.dtype
    v_pad = ((vector_size + 127) // 128) * 128  # lane-dense output width
    b_pad = ((batch + 7) // 8) * 8              # sublane-aligned batch

    def pad_time_major(a):
        # (B, T, F) -> (T*Bp, F), batch zero-padded to Bp, time-major flatten.
        f = a.shape[2]
        a_p = jnp.zeros((b_pad, seq_len, f), dtype).at[:batch].set(a)
        return jnp.transpose(a_p, (1, 0, 2)).reshape(seq_len * b_pad, f)

    ce_tm = pad_time_major(career_embedding)
    tok_tm = pad_time_major(token)
    h0_p = jnp.zeros((num_layers, b_pad, hidden_size), dtype).at[:, :batch].set(hidden_state)

    # Flatten weights: layer 0 has its W_ih split row-wise (career | token);
    # biases fused once here so the kernel never re-adds b_ih + b_hh.
    layers = params["layers"]
    w_ih0, w_hh0, b_ih0, b_hh0 = layers[0]
    flat_w = [w_ih0[:vector_size], w_ih0[vector_size:], w_hh0, b_ih0 + b_hh0]
    for w_ih, w_hh, b_ih, b_hh in layers[1:]:
        flat_w += [w_ih, w_hh, b_ih + b_hh]

    w_out_pad = jnp.zeros((hidden_size, v_pad), dtype).at[:, :vector_size].set(params["w_out"])
    b_out_pad = jnp.zeros((1, v_pad), dtype).at[:, :vector_size].set(params["b_out"])

    inputs = [ce_tm, tok_tm, h0_p] + flat_w + [w_out_pad, b_out_pad]

    vmem_spec = pl.BlockSpec(memory_space=pltpu.MemorySpace.VMEM)
    out_shapes = (
        jax.ShapeDtypeStruct((seq_len * b_pad, v_pad), dtype),          # lane-dense results
        jax.ShapeDtypeStruct((num_layers, b_pad, hidden_size), dtype),  # final hidden
    )

    out_flat, hidden_p = pl.pallas_call(
        _make_kernel(num_layers, seq_len, b_pad, hidden_size),
        out_shape=out_shapes,
        in_specs=[vmem_spec] * len(inputs),
        out_specs=(vmem_spec, vmem_spec),
        scratch_shapes=[
            pltpu.VMEM((seq_len * b_pad, hidden_size), jnp.float32),
        ],
    )(*inputs)

    # Undo lane/batch padding + time-major layout outside the kernel.
    results = (
        out_flat.reshape(seq_len, b_pad, v_pad)[:, :batch, :vector_size].transpose(1, 0, 2)
    )                                                                    # (B, T, V)
    hidden = hidden_p[:, :batch, :]                                      # (L, B, H)
    return results, hidden


def _reference_forward(career_embedding, hidden_state, token, params):
    """Pure-JAX f32 reference matching torch semantics (dropout in eval mode)."""
    x = jnp.concatenate([career_embedding, token], axis=2)
    layer_in = x
    hn = []
    for layer, (w_ih, w_hh, b_ih, b_hh) in enumerate(params["layers"]):
        h = hidden_state[layer]
        outs = []
        for t in range(x.shape[1]):
            h = jnp.tanh(layer_in[:, t, :] @ w_ih + b_ih + h @ w_hh + b_hh)
            outs.append(h)
        layer_in = jnp.stack(outs, axis=1)
        hn.append(h)
    out = layer_in @ params["w_out"] + params["b_out"]
    return out, jnp.stack(hn, axis=0)


if __name__ == "__main__":
    # Small shapes consistent with the module's forward.
    B, T = 2, 8
    vector_size, hidden_size, num_layers, dpo = 16, 32, 2, 0.1

    key = jax.random.PRNGKey(0)
    kp, k_ce, k_tok, k_h0 = jax.random.split(key, 4)

    params = init_params(kp, vector_size, hidden_size, num_layers)
    career_embedding = jax.random.normal(k_ce, (B, T, vector_size), jnp.float32)
    token = jax.random.normal(k_tok, (B, T, hidden_size), jnp.float32)
    hidden_state = jax.random.normal(k_h0, (num_layers, B, hidden_size), jnp.float32)

    results, hidden = career_decoder_forward(
        career_embedding, hidden_state, token, params, num_layers=num_layers
    )
    jax.block_until_ready((results, hidden))

    ref_results, ref_hidden = _reference_forward(
        career_embedding, hidden_state, token, params
    )
    assert results.shape == (B, T, vector_size)
    assert hidden.shape == (num_layers, B, hidden_size)
    # bf16 MXU operands on the recurrent chain -> relaxed tolerance vs f32 ref.
    assert jnp.allclose(results, ref_results, atol=2e-2, rtol=2e-2)
    assert jnp.allclose(hidden, ref_hidden, atol=2e-2, rtol=2e-2)

    print("KERNEL_OK")
</pallas_src>

<mosaic_0001>
module attributes {stable_mosaic.version = 11 : i64} {
  func.func @kernel(%arg0: memref<64x16xf32, #tpu.memory_space<vmem>>, %arg1: memref<64x32xf32, #tpu.memory_space<vmem>>, %arg2: memref<2x8x32xf32, #tpu.memory_space<vmem>>, %arg3: memref<16x32xf32, #tpu.memory_space<vmem>>, %arg4: memref<32x32xf32, #tpu.memory_space<vmem>>, %arg5: memref<32x32xf32, #tpu.memory_space<vmem>>, %arg6: memref<1x32xf32, #tpu.memory_space<vmem>>, %arg7: memref<32x32xf32, #tpu.memory_space<vmem>>, %arg8: memref<32x32xf32, #tpu.memory_space<vmem>>, %arg9: memref<1x32xf32, #tpu.memory_space<vmem>>, %arg10: memref<32x128xf32, #tpu.memory_space<vmem>>, %arg11: memref<1x128xf32, #tpu.memory_space<vmem>>, %arg12: memref<64x128xf32, #tpu.memory_space<vmem>>, %arg13: memref<2x8x32xf32, #tpu.memory_space<vmem>>, %arg14: memref<64x32xf32, #tpu.memory_space<vmem>>) attributes {dimension_semantics = [], scalar_prefetch = 0 : i64, scratch_operands = 1 : i64, tpu.core_type = #tpu.core_type<tc>} {
    %c0 = arith.constant 0 : index
    %c0_0 = arith.constant 0 : index
    %0 = vector.load %arg3[%c0, %c0_0] : memref<16x32xf32, #tpu.memory_space<vmem>>, vector<16x32xf32>
    %1 = arith.truncf %0 : vector<16x32xf32> to vector<16x32xbf16>
    %c0_1 = arith.constant 0 : index
    %c0_2 = arith.constant 0 : index
    %2 = vector.load %arg4[%c0_1, %c0_2] : memref<32x32xf32, #tpu.memory_space<vmem>>, vector<32x32xf32>
    %3 = arith.truncf %2 : vector<32x32xf32> to vector<32x32xbf16>
    %c0_3 = arith.constant 0 : index
    %c0_4 = arith.constant 0 : index
    %4 = vector.load %arg5[%c0_3, %c0_4] : memref<32x32xf32, #tpu.memory_space<vmem>>, vector<32x32xf32>
    %5 = arith.truncf %4 : vector<32x32xf32> to vector<32x32xbf16>
    %c0_5 = arith.constant 0 : index
    %c0_6 = arith.constant 0 : index
    %6 = vector.load %arg6[%c0_5, %c0_6] : memref<1x32xf32, #tpu.memory_space<vmem>>, vector<1x32xf32>
    %c0_7 = arith.constant 0 : index
    %c0_8 = arith.constant 0 : index
    %7 = vector.load %arg7[%c0_7, %c0_8] : memref<32x32xf32, #tpu.memory_space<vmem>>, vector<32x32xf32>
    %8 = arith.truncf %7 : vector<32x32xf32> to vector<32x32xbf16>
    %c0_9 = arith.constant 0 : index
    %c0_10 = arith.constant 0 : index
    %9 = vector.load %arg8[%c0_9, %c0_10] : memref<32x32xf32, #tpu.memory_space<vmem>>, vector<32x32xf32>
    %10 = arith.truncf %9 : vector<32x32xf32> to vector<32x32xbf16>
    %c0_11 = arith.constant 0 : index
    %c0_12 = arith.constant 0 : index
    %11 = vector.load %arg9[%c0_11, %c0_12] : memref<1x32xf32, #tpu.memory_space<vmem>>, vector<1x32xf32>
    %12 = vector.shape_cast %11 : vector<1x32xf32> to vector<1x32xf32>
    %13 = vector.broadcast %12 : vector<1x32xf32> to vector<8x32xf32>
    %c0_13 = arith.constant 0 : index
    %c0_14 = arith.constant 0 : index
    %14 = vector.load %arg0[%c0_13, %c0_14] : memref<64x16xf32, #tpu.memory_space<vmem>>, vector<64x16xf32>
    %15 = arith.truncf %14 : vector<64x16xf32> to vector<64x16xbf16>
    %cst = arith.constant dense<0.000000e+00> : vector<64x32xf32>
    %16 = tpu.matmul %15, %1, %cst {dimension_numbers = #tpu.dot_dimension_numbers<[1], [0], [0], [1], [0, 0, 1, 1], [], []>} : vector<64x16xbf16>, vector<16x32xbf16>, vector<64x32xf32> -> vector<64x32xf32>
    %c0_15 = arith.constant 0 : index
    %c0_16 = arith.constant 0 : index
    %17 = vector.load %arg1[%c0_15, %c0_16] : memref<64x32xf32, #tpu.memory_space<vmem>>, vector<64x32xf32>
    %18 = arith.truncf %17 : vector<64x32xf32> to vector<64x32xbf16>
    %cst_17 = arith.constant dense<0.000000e+00> : vector<64x32xf32>
    %19 = tpu.matmul %18, %3, %cst_17 {dimension_numbers = #tpu.dot_dimension_numbers<[1], [0], [0], [1], [0, 0, 1, 1], [], []>} : vector<64x32xbf16>, vector<32x32xbf16>, vector<64x32xf32> -> vector<64x32xf32>
    %20 = arith.addf %16, %19 : vector<64x32xf32>
    %21 = vector.broadcast %6 : vector<1x32xf32> to vector<64x32xf32>
    %22 = arith.addf %20, %21 : vector<64x32xf32>
    %c0_18 = arith.constant 0 : index
    %c0_19 = arith.constant 0 : index
    %c0_20 = arith.constant 0 : index
    %23 = vector.load %arg2[%c0_18, %c0_19, %c0_20] : memref<2x8x32xf32, #tpu.memory_space<vmem>>, vector<1x8x32xf32>
    %24 = vector.shape_cast %23 : vector<1x8x32xf32> to vector<8x32xf32>
    %c1 = arith.constant 1 : index
    %c0_21 = arith.constant 0 : index
    %c0_22 = arith.constant 0 : index
    %25 = vector.load %arg2[%c1, %c0_21, %c0_22] : memref<2x8x32xf32, #tpu.memory_space<vmem>>, vector<1x8x32xf32>
    %26 = vector.shape_cast %25 : vector<1x8x32xf32> to vector<8x32xf32>
    %27 = vector.extract_strided_slice %22 {offsets = [0, 0], sizes = [8, 32], strides = [1, 1]} : vector<64x32xf32> to vector<8x32xf32>
    %28 = arith.truncf %24 : vector<8x32xf32> to vector<8x32xbf16>
    %cst_23 = arith.constant dense<0.000000e+00> : vector<8x32xf32>
    %29 = tpu.matmul %28, %5, %cst_23 {dimension_numbers = #tpu.dot_dimension_numbers<[1], [0], [0], [1], [0, 0, 1, 1], [], []>} : vector<8x32xbf16>, vector<32x32xbf16>, vector<8x32xf32> -> vector<8x32xf32>
    %30 = arith.addf %27, %29 : vector<8x32xf32>
    %31 = math.tanh %30 : vector<8x32xf32>
    %32 = vector.extract_strided_slice %22 {offsets = [8, 0], sizes = [8, 32], strides = [1, 1]} : vector<64x32xf32> to vector<8x32xf32>
    %33 = arith.truncf %31 : vector<8x32xf32> to vector<8x32xbf16>
    %cst_24 = arith.constant dense<0.000000e+00> : vector<8x32xf32>
    %34 = tpu.matmul %33, %5, %cst_24 {dimension_numbers = #tpu.dot_dimension_numbers<[1], [0], [0], [1], [0, 0, 1, 1], [], []>} : vector<8x32xbf16>, vector<32x32xbf16>, vector<8x32xf32> -> vector<8x32xf32>
    %35 = arith.addf %32, %34 : vector<8x32xf32>
    %36 = math.tanh %35 : vector<8x32xf32>
    %37 = arith.truncf %31 : vector<8x32xf32> to vector<8x32xbf16>
    %cst_25 = arith.constant dense<0.000000e+00> : vector<8x32xf32>
    %38 = tpu.matmul %37, %8, %cst_25 {dimension_numbers = #tpu.dot_dimension_numbers<[1], [0], [0], [1], [0, 0, 1, 1], [], []>} : vector<8x32xbf16>, vector<32x32xbf16>, vector<8x32xf32> -> vector<8x32xf32>
    %39 = arith.addf %38, %13 : vector<8x32xf32>
    %40 = arith.truncf %26 : vector<8x32xf32> to vector<8x32xbf16>
    %cst_26 = arith.constant dense<0.000000e+00> : vector<8x32xf32>
    %41 = tpu.matmul %40, %10, %cst_26 {dimension_numbers = #tpu.dot_dimension_numbers<[1], [0], [0], [1], [0, 0, 1, 1], [], []>} : vector<8x32xbf16>, vector<32x32xbf16>, vector<8x32xf32> -> vector<8x32xf32>
    %42 = arith.addf %39, %41 : vector<8x32xf32>
    %43 = math.tanh %42 : vector<8x32xf32>
    %c0_27 = arith.constant 0 : index
    %c0_28 = arith.constant 0 : index
    %44 = vector.load %arg14[%c0_27, %c0_28] : memref<64x32xf32, #tpu.memory_space<vmem>>, vector<8x32xf32>
    tpu.vector_store %arg14[%c0_27, %c0_28], %43 {strides = array<i32>} : memref<64x32xf32, #tpu.memory_space<vmem>>, vector<8x32xf32>,
    %45 = vector.extract_strided_slice %22 {offsets = [16, 0], sizes = [8, 32], strides = [1, 1]} : vector<64x32xf32> to vector<8x32xf32>
    %46 = arith.truncf %36 : vector<8x32xf32> to vector<8x32xbf16>
    %cst_29 = arith.constant dense<0.000000e+00> : vector<8x32xf32>
    %47 = tpu.matmul %46, %5, %cst_29 {dimension_numbers = #tpu.dot_dimension_numbers<[1], [0], [0], [1], [0, 0, 1, 1], [], []>} : vector<8x32xbf16>, vector<32x32xbf16>, vector<8x32xf32> -> vector<8x32xf32>
    %48 = arith.addf %45, %47 : vector<8x32xf32>
    %49 = math.tanh %48 : vector<8x32xf32>
    %50 = arith.truncf %36 : vector<8x32xf32> to vector<8x32xbf16>
    %cst_30 = arith.constant dense<0.000000e+00> : vector<8x32xf32>
    %51 = tpu.matmul %50, %8, %cst_30 {dimension_numbers = #tpu.dot_dimension_numbers<[1], [0], [0], [1], [0, 0, 1, 1], [], []>} : vector<8x32xbf16>, vector<32x32xbf16>, vector<8x32xf32> -> vector<8x32xf32>
    %52 = arith.addf %51, %13 : vector<8x32xf32>
    %53 = arith.truncf %43 : vector<8x32xf32> to vector<8x32xbf16>
    %cst_31 = arith.constant dense<0.000000e+00> : vector<8x32xf32>
    %54 = tpu.matmul %53, %10, %cst_31 {dimension_numbers = #tpu.dot_dimension_numbers<[1], [0], [0], [1], [0, 0, 1, 1], [], []>} : vector<8x32xbf16>, vector<32x32xbf16>, vector<8x32xf32> -> vector<8x32xf32>
    %55 = arith.addf %52, %54 : vector<8x32xf32>
    %56 = math.tanh %55 : vector<8x32xf32>
    %c8 = arith.constant 8 : index
    %c0_32 = arith.constant 0 : index
    %57 = vector.load %arg14[%c8, %c0_32] : memref<64x32xf32, #tpu.memory_space<vmem>>, vector<8x32xf32>
    tpu.vector_store %arg14[%c8, %c0_32], %56 {strides = array<i32>} : memref<64x32xf32, #tpu.memory_space<vmem>>, vector<8x32xf32>,
    %58 = vector.extract_strided_slice %22 {offsets = [24, 0], sizes = [8, 32], strides = [1, 1]} : vector<64x32xf32> to vector<8x32xf32>
    %59 = arith.truncf %49 : vector<8x32xf32> to vector<8x32xbf16>
    %cst_33 = arith.constant dense<0.000000e+00> : vector<8x32xf32>
    %60 = tpu.matmul %59, %5, %cst_33 {dimension_numbers = #tpu.dot_dimension_numbers<[1], [0], [0], [1], [0, 0, 1, 1], [], []>} : vector<8x32xbf16>, vector<32x32xbf16>, vector<8x32xf32> -> vector<8x32xf32>
    %61 = arith.addf %58, %60 : vector<8x32xf32>
    %62 = math.tanh %61 : vector<8x32xf32>
    %63 = arith.truncf %49 : vector<8x32xf32> to vector<8x32xbf16>
    %cst_34 = arith.constant dense<0.000000e+00> : vector<8x32xf32>
    %64 = tpu.matmul %63, %8, %cst_34 {dimension_numbers = #tpu.dot_dimension_numbers<[1], [0], [0], [1], [0, 0, 1, 1], [], []>} : vector<8x32xbf16>, vector<32x32xbf16>, vector<8x32xf32> -> vector<8x32xf32>
    %65 = arith.addf %64, %13 : vector<8x32xf32>
    %66 = arith.truncf %56 : vector<8x32xf32> to vector<8x32xbf16>
    %cst_35 = arith.constant dense<0.000000e+00> : vector<8x32xf32>
    %67 = tpu.matmul %66, %10, %cst_35 {dimension_numbers = #tpu.dot_dimension_numbers<[1], [0], [0], [1], [0, 0, 1, 1], [], []>} : vector<8x32xbf16>, vector<32x32xbf16>, vector<8x32xf32> -> vector<8x32xf32>
    %68 = arith.addf %65, %67 : vector<8x32xf32>
    %69 = math.tanh %68 : vector<8x32xf32>
    %c16 = arith.constant 16 : index
    %c0_36 = arith.constant 0 : index
    %70 = vector.load %arg14[%c16, %c0_36] : memref<64x32xf32, #tpu.memory_space<vmem>>, vector<8x32xf32>
    tpu.vector_store %arg14[%c16, %c0_36], %69 {strides = array<i32>} : memref<64x32xf32, #tpu.memory_space<vmem>>, vector<8x32xf32>,
    %71 = vector.extract_strided_slice %22 {offsets = [32, 0], sizes = [8, 32], strides = [1, 1]} : vector<64x32xf32> to vector<8x32xf32>
    %72 = arith.truncf %62 : vector<8x32xf32> to vector<8x32xbf16>
    %cst_37 = arith.constant dense<0.000000e+00> : vector<8x32xf32>
    %73 = tpu.matmul %72, %5, %cst_37 {dimension_numbers = #tpu.dot_dimension_numbers<[1], [0], [0], [1], [0, 0, 1, 1], [], []>} : vector<8x32xbf16>, vector<32x32xbf16>, vector<8x32xf32> -> vector<8x32xf32>
    %74 = arith.addf %71, %73 : vector<8x32xf32>
    %75 = math.tanh %74 : vector<8x32xf32>
    %76 = arith.truncf %62 : vector<8x32xf32> to vector<8x32xbf16>
    %cst_38 = arith.constant dense<0.000000e+00> : vector<8x32xf32>
    %77 = tpu.matmul %76, %8, %cst_38 {dimension_numbers = #tpu.dot_dimension_numbers<[1], [0], [0], [1], [0, 0, 1, 1], [], []>} : vector<8x32xbf16>, vector<32x32xbf16>, vector<8x32xf32> -> vector<8x32xf32>
    %78 = arith.addf %77, %13 : vector<8x32xf32>
    %79 = arith.truncf %69 : vector<8x32xf32> to vector<8x32xbf16>
    %cst_39 = arith.constant dense<0.000000e+00> : vector<8x32xf32>
    %80 = tpu.matmul %79, %10, %cst_39 {dimension_numbers = #tpu.dot_dimension_numbers<[1], [0], [0], [1], [0, 0, 1, 1], [], []>} : vector<8x32xbf16>, vector<32x32xbf16>, vector<8x32xf32> -> vector<8x32xf32>
    %81 = arith.addf %78, %80 : vector<8x32xf32>
    %82 = math.tanh %81 : vector<8x32xf32>
    %c24 = arith.constant 24 : index
    %c0_40 = arith.constant 0 : index
    %83 = vector.load %arg14[%c24, %c0_40] : memref<64x32xf32, #tpu.memory_space<vmem>>, vector<8x32xf32>
    tpu.vector_store %arg14[%c24, %c0_40], %82 {strides = array<i32>} : memref<64x32xf32, #tpu.memory_space<vmem>>, vector<8x32xf32>,
    %84 = vector.extract_strided_slice %22 {offsets = [40, 0], sizes = [8, 32], strides = [1, 1]} : vector<64x32xf32> to vector<8x32xf32>
    %85 = arith.truncf %75 : vector<8x32xf32> to vector<8x32xbf16>
    %cst_41 = arith.constant dense<0.000000e+00> : vector<8x32xf32>
    %86 = tpu.matmul %85, %5, %cst_41 {dimension_numbers = #tpu.dot_dimension_numbers<[1], [0], [0], [1], [0, 0, 1, 1], [], []>} : vector<8x32xbf16>, vector<32x32xbf16>, vector<8x32xf32> -> vector<8x32xf32>
    %87 = arith.addf %84, %86 : vector<8x32xf32>
    %88 = math.tanh %87 : vector<8x32xf32>
    %89 = arith.truncf %75 : vector<8x32xf32> to vector<8x32xbf16>
    %cst_42 = arith.constant dense<0.000000e+00> : vector<8x32xf32>
    %90 = tpu.matmul %89, %8, %cst_42 {dimension_numbers = #tpu.dot_dimension_numbers<[1], [0], [0], [1], [0, 0, 1, 1], [], []>} : vector<8x32xbf16>, vector<32x32xbf16>, vector<8x32xf32> -> vector<8x32xf32>
    %91 = arith.addf %90, %13 : vector<8x32xf32>
    %92 = arith.truncf %82 : vector<8x32xf32> to vector<8x32xbf16>
    %cst_43 = arith.constant dense<0.000000e+00> : vector<8x32xf32>
    %93 = tpu.matmul %92, %10, %cst_43 {dimension_numbers = #tpu.dot_dimension_numbers<[1], [0], [0], [1], [0, 0, 1, 1], [], []>} : vector<8x32xbf16>, vector<32x32xbf16>, vector<8x32xf32> -> vector<8x32xf32>
    %94 = arith.addf %91, %93 : vector<8x32xf32>
    %95 = math.tanh %94 : vector<8x32xf32>
    %c32 = arith.constant 32 : index
    %c0_44 = arith.constant 0 : index
    %96 = vector.load %arg14[%c32, %c0_44] : memref<64x32xf32, #tpu.memory_space<vmem>>, vector<8x32xf32>
    tpu.vector_store %arg14[%c32, %c0_44], %95 {strides = array<i32>} : memref<64x32xf32, #tpu.memory_space<vmem>>, vector<8x32xf32>,
    %97 = vector.extract_strided_slice %22 {offsets = [48, 0], sizes = [8, 32], strides = [1, 1]} : vector<64x32xf32> to vector<8x32xf32>
    %98 = arith.truncf %88 : vector<8x32xf32> to vector<8x32xbf16>
    %cst_45 = arith.constant dense<0.000000e+00> : vector<8x32xf32>
    %99 = tpu.matmul %98, %5, %cst_45 {dimension_numbers = #tpu.dot_dimension_numbers<[1], [0], [0], [1], [0, 0, 1, 1], [], []>} : vector<8x32xbf16>, vector<32x32xbf16>, vector<8x32xf32> -> vector<8x32xf32>
    %100 = arith.addf %97, %99 : vector<8x32xf32>
    %101 = math.tanh %100 : vector<8x32xf32>
    %102 = arith.truncf %88 : vector<8x32xf32> to vector<8x32xbf16>
    %cst_46 = arith.constant dense<0.000000e+00> : vector<8x32xf32>
    %103 = tpu.matmul %102, %8, %cst_46 {dimension_numbers = #tpu.dot_dimension_numbers<[1], [0], [0], [1], [0, 0, 1, 1], [], []>} : vector<8x32xbf16>, vector<32x32xbf16>, vector<8x32xf32> -> vector<8x32xf32>
    %104 = arith.addf %103, %13 : vector<8x32xf32>
    %105 = arith.truncf %95 : vector<8x32xf32> to vector<8x32xbf16>
    %cst_47 = arith.constant dense<0.000000e+00> : vector<8x32xf32>
    %106 = tpu.matmul %105, %10, %cst_47 {dimension_numbers = #tpu.dot_dimension_numbers<[1], [0], [0], [1], [0, 0, 1, 1], [], []>} : vector<8x32xbf16>, vector<32x32xbf16>, vector<8x32xf32> -> vector<8x32xf32>
    %107 = arith.addf %104, %106 : vector<8x32xf32>
    %108 = math.tanh %107 : vector<8x32xf32>
    %c40 = arith.constant 40 : index
    %c0_48 = arith.constant 0 : index
    %109 = vector.load %arg14[%c40, %c0_48] : memref<64x32xf32, #tpu.memory_space<vmem>>, vector<8x32xf32>
    tpu.vector_store %arg14[%c40, %c0_48], %108 {strides = array<i32>} : memref<64x32xf32, #tpu.memory_space<vmem>>, vector<8x32xf32>,
    %110 = vector.extract_strided_slice %22 {offsets = [56, 0], sizes = [8, 32], strides = [1, 1]} : vector<64x32xf32> to vector<8x32xf32>
    %111 = arith.truncf %101 : vector<8x32xf32> to vector<8x32xbf16>
    %cst_49 = arith.constant dense<0.000000e+00> : vector<8x32xf32>
    %112 = tpu.matmul %111, %5, %cst_49 {dimension_numbers = #tpu.dot_dimension_numbers<[1], [0], [0], [1], [0, 0, 1, 1], [], []>} : vector<8x32xbf16>, vector<32x32xbf16>, vector<8x32xf32> -> vector<8x32xf32>
    %113 = arith.addf %110, %112 : vector<8x32xf32>
    %114 = math.tanh %113 : vector<8x32xf32>
    %115 = arith.truncf %101 : vector<8x32xf32> to vector<8x32xbf16>
    %cst_50 = arith.constant dense<0.000000e+00> : vector<8x32xf32>
    %116 = tpu.matmul %115, %8, %cst_50 {dimension_numbers = #tpu.dot_dimension_numbers<[1], [0], [0], [1], [0, 0, 1, 1], [], []>} : vector<8x32xbf16>, vector<32x32xbf16>, vector<8x32xf32> -> vector<8x32xf32>
    %117 = arith.addf %116, %13 : vector<8x32xf32>
    %118 = arith.truncf %108 : vector<8x32xf32> to vector<8x32xbf16>
    %cst_51 = arith.constant dense<0.000000e+00> : vector<8x32xf32>
    %119 = tpu.matmul %118, %10, %cst_51 {dimension_numbers = #tpu.dot_dimension_numbers<[1], [0], [0], [1], [0, 0, 1, 1], [], []>} : vector<8x32xbf16>, vector<32x32xbf16>, vector<8x32xf32> -> vector<8x32xf32>
    %120 = arith.addf %117, %119 : vector<8x32xf32>
    %121 = math.tanh %120 : vector<8x32xf32>
    %c48 = arith.constant 48 : index
    %c0_52 = arith.constant 0 : index
    %122 = vector.load %arg14[%c48, %c0_52] : memref<64x32xf32, #tpu.memory_space<vmem>>, vector<8x32xf32>
    tpu.vector_store %arg14[%c48, %c0_52], %121 {strides = array<i32>} : memref<64x32xf32, #tpu.memory_space<vmem>>, vector<8x32xf32>,
    %123 = arith.truncf %114 : vector<8x32xf32> to vector<8x32xbf16>
    %cst_53 = arith.constant dense<0.000000e+00> : vector<8x32xf32>
    %124 = tpu.matmul %123, %8, %cst_53 {dimension_numbers = #tpu.dot_dimension_numbers<[1], [0], [0], [1], [0, 0, 1, 1], [], []>} : vector<8x32xbf16>, vector<32x32xbf16>, vector<8x32xf32> -> vector<8x32xf32>
    %125 = arith.addf %124, %13 : vector<8x32xf32>
    %126 = arith.truncf %121 : vector<8x32xf32> to vector<8x32xbf16>
    %cst_54 = arith.constant dense<0.000000e+00> : vector<8x32xf32>
    %127 = tpu.matmul %126, %10, %cst_54 {dimension_numbers = #tpu.dot_dimension_numbers<[1], [0], [0], [1], [0, 0, 1, 1], [], []>} : vector<8x32xbf16>, vector<32x32xbf16>, vector<8x32xf32> -> vector<8x32xf32>
    %128 = arith.addf %125, %127 : vector<8x32xf32>
    %129 = math.tanh %128 : vector<8x32xf32>
    %c56 = arith.constant 56 : index
    %c0_55 = arith.constant 0 : index
    %130 = vector.load %arg14[%c56, %c0_55] : memref<64x32xf32, #tpu.memory_space<vmem>>, vector<8x32xf32>
    tpu.vector_store %arg14[%c56, %c0_55], %129 {strides = array<i32>} : memref<64x32xf32, #tpu.memory_space<vmem>>, vector<8x32xf32>,
    %c0_56 = arith.constant 0 : index
    %c0_57 = arith.constant 0 : index
    %c0_58 = arith.constant 0 : index
    %131 = vector.load %arg13[%c0_56, %c0_57, %c0_58] : memref<2x8x32xf32, #tpu.memory_space<vmem>>, vector<1x8x32xf32>
    %132 = vector.shape_cast %131 : vector<1x8x32xf32> to vector<8x32xf32>
    %133 = vector.shape_cast %114 : vector<8x32xf32> to vector<1x8x32xf32>
    tpu.vector_store %arg13[%c0_56, %c0_57, %c0_58], %133 {strides = array<i32>} : memref<2x8x32xf32, #tpu.memory_space<vmem>>, vector<1x8x32xf32>,
    %c1_59 = arith.constant 1 : index
    %c0_60 = arith.constant 0 : index
    %c0_61 = arith.constant 0 : index
    %134 = vector.load %arg13[%c1_59, %c0_60, %c0_61] : memref<2x8x32xf32, #tpu.memory_space<vmem>>, vector<1x8x32xf32>
    %135 = vector.shape_cast %134 : vector<1x8x32xf32> to vector<8x32xf32>
    %136 = vector.shape_cast %129 : vector<8x32xf32> to vector<1x8x32xf32>
    tpu.vector_store %arg13[%c1_59, %c0_60, %c0_61], %136 {strides = array<i32>} : memref<2x8x32xf32, #tpu.memory_space<vmem>>, vector<1x8x32xf32>,
    %c0_62 = arith.constant 0 : index
    %c0_63 = arith.constant 0 : index
    %137 = vector.load %arg14[%c0_62, %c0_63] : memref<64x32xf32, #tpu.memory_space<vmem>>, vector<64x32xf32>
    %138 = arith.truncf %137 : vector<64x32xf32> to vector<64x32xbf16>
    %c0_64 = arith.constant 0 : index
    %c0_65 = arith.constant 0 : index
    %139 = vector.load %arg10[%c0_64, %c0_65] : memref<32x128xf32, #tpu.memory_space<vmem>>, vector<32x128xf32>
    %140 = arith.truncf %139 : vector<32x128xf32> to vector<32x128xbf16>
    %cst_66 = arith.constant dense<0.000000e+00> : vector<64x128xf32>
    %141 = tpu.matmul %138, %140, %cst_66 {dimension_numbers = #tpu.dot_dimension_numbers<[1], [0], [0], [1], [0, 0, 1, 1], [], []>} : vector<64x32xbf16>, vector<32x128xbf16>, vector<64x128xf32> -> vector<64x128xf32>
    %c0_67 = arith.constant 0 : index
    %c0_68 = arith.constant 0 : index
    %142 = vector.load %arg11[%c0_67, %c0_68] : memref<1x128xf32, #tpu.memory_space<vmem>>, vector<1x128xf32>
    %143 = vector.broadcast %142 : vector<1x128xf32> to vector<64x128xf32>
    %144 = arith.addf %141, %143 : vector<64x128xf32>
    %c0_69 = arith.constant 0 : index
    %c0_70 = arith.constant 0 : index
    %145 = vector.load %arg12[%c0_69, %c0_70] : memref<64x128xf32, #tpu.memory_space<vmem>>, vector<64x128xf32>
    tpu.vector_store %arg12[%c0_69, %c0_70], %144 {strides = array<i32>} : memref<64x128xf32, #tpu.memory_space<vmem>>, vector<64x128xf32>,
    return
  }
}

</mosaic_0001>

<bundles_post_ra>
// kernel: career_decoder_forward.1
= control target key start
LH: loop header
LB: loop body
LE: loop exit
PB: predicated region body
PF: predicated region fallthrough
CT: control target
= control target key end

     0   :  { %vm142_vm0 = vcmask 130048   ;;  %vm100_vm1 = vcmask 261120   ;;  %s1153_s4 = inlined_call_operand.vmem [shape: f32[32,32], index: 4, kind: input, shape index: {}]   ;;  %s1154_s1 = inlined_call_operand.vmem [shape: f32[64,32], index: 1, kind: input, shape index: {}]   ;;  %s1155_s3 = inlined_call_operand.vmem [shape: f32[16,32], index: 3, kind: input, shape index: {}]   ;;  %s1156_s0 = inlined_call_operand.vmem [shape: f32[64,16], index: 0, kind: input, shape index: {}]   ;;  %s1157_s5 = inlined_call_operand.vmem [shape: f32[32,32], index: 5, kind: input, shape index: {}]   ;;  %s1158_s2 = inlined_call_operand.vmem [shape: f32[2,8,32], index: 2, kind: input, shape index: {}]   ;;  %s1159_s6 = inlined_call_operand.vmem [shape: f32[1,32], index: 6, kind: input, shape index: {}]   ;;  %s1160_s7 = inlined_call_operand.vmem [shape: f32[32,32], index: 7, kind: input, shape index: {}]   ;;  %s1161_s8 = inlined_call_operand.vmem [shape: f32[32,32], index: 8, kind: input, shape index: {}]   ;;  %s1162_s9 = inlined_call_operand.vmem [shape: f32[1,32], index: 9, kind: input, shape index: {}]   ;;  %s1163_s10 = inlined_call_operand.vmem [shape: f32[32,128], index: 10, kind: input, shape index: {}]   ;;  %s1164_s11 = inlined_call_operand.vmem [shape: f32[1,128], index: 11, kind: input, shape index: {}]   ;;  %s1165_s13 = inlined_call_operand.vmem [shape: f32[2,8,32], index: 13, kind: output, shape index: {1}]   ;;  %s1166_s12 = inlined_call_operand.vmem [shape: f32[64,128], index: 12, kind: output, shape index: {0}]  }
   0x1   :  { %v49_v0 = vld [vmem:[%s1153_s4 + $0x10] sm:$0xff]  ;;  %v50_v1 = vld [vmem:[%s1153_s4 + $0x18] sm:$0xff]  ;;  %v47_v2 = vld [vmem:[%s1153_s4] sm:$0xff] }
   0x2   :  { %v52_v3 = vpack.c.bf16 %v50_v1, %v49_v0  ;;  %v48_v4 = vld [vmem:[%s1153_s4 + $0x8] sm:$0xff]  ;;  %v88_v5 = vld [vmem:[%s1154_s1] sm:$0xff]  ;;  %v94_v11 = vld [vmem:[%s1154_s1 + $0x30] sm:$0xff] }
   0x3   :  { %v44_v6 = vld [vmem:[%s1155_s3] sm:$0xff]  ;;  %v45_v7 = vld [vmem:[%s1155_s3 + $0x8] sm:$0xff]  ;;  %v51_v8 = vpack.c.bf16 %v48_v4, %v47_v2  ;;  %v95_v12 = vld [vmem:[%s1154_s1 + $0x38] sm:$0xff] }
   0x4   :  { %119 = vmatpush.bf16.msra.mxu0 %v52_v3  ;;  %v89_v9 = vld [vmem:[%s1154_s1 + $0x8] sm:$0xff]  ;;  %v46_v10 = vpack.c.bf16 %v45_v7, %v44_v6  ;;  %738 = vmatpush.bf16.msra.mxu2 %v52_v3  ;;  %v82_v13 = vld [vmem:[%s1156_s0 + $0x30] sm:$0xff]  ;;  %v83_v14 = vld [vmem:[%s1156_s0 + $0x38] sm:$0xff]  ;;  %v99_v19 = vpack.c.bf16 %v95_v12, %v94_v11 }
   0x5   :  { %v55_v15 = vld [vmem:[%s1157_s5 + $0x10] sm:$0xff]  ;;  %v87_v16 = vpack.c.bf16 %v83_v14, %v82_v13  ;;  %v56_v17 = vld [vmem:[%s1157_s5 + $0x18] sm:$0xff]  ;;  %v96_v18 = vpack.c.bf16 %v89_v9, %v88_v5  ;;  %v80_v21 = vld [vmem:[%s1156_s0 + $0x20] sm:$0xff] }
   0x6   :  { %741 = vmatpush.bf16.msra.mxu3 %v46_v10  ;;  %740 = vmatpush.bf16.msra.mxu1 %v46_v10  ;;  %v889_v20 = vpack.c.bf16 %v56_v17, %v55_v15  ;;  %v81_v22 = vld [vmem:[%s1156_s0 + $0x28] sm:$0xff]  ;;  %v53_v24 = vld [vmem:[%s1157_s5] sm:$0xff]  ;;  %v90_v27 = vld [vmem:[%s1154_s1 + $0x10] sm:$0xff] }
   0x7   :  { %v86_v23 = vpack.c.bf16 %v81_v22, %v80_v21  ;;  %v54_v25 = vld [vmem:[%s1157_s5 + $0x8] sm:$0xff]  ;;  %v91_v28 = vld [vmem:[%s1154_s1 + $0x18] sm:$0xff]  ;;  %v195_v29 = vld [vmem:[%s1158_s2] sm:$0xff] }
   0x8   :  { %120 = vmatpush.bf16.msra.mxu0 %v51_v8  ;;  %739 = vmatpush.bf16.msra.mxu2 %v51_v8  ;;  %v909_v26 = vpack.c.bf16 %v54_v25, %v53_v24  ;;  %v97_v30 = vpack.c.bf16 %v91_v28, %v90_v27  ;;  %v198_v31 = vpack.c.bf16 %v195_v29, %v195_v29  ;;  %v92_v32 = vld [vmem:[%s1154_s1 + $0x20] sm:$0xff]  ;;  %v93_v33 = vld [vmem:[%s1154_s1 + $0x28] sm:$0xff]  ;;  %v78_v38 = vld [vmem:[%s1156_s0 + $0x10] sm:$0xff] }
   0x9   :  { %707 = vmatmul.msk.bf16.vlgmr.msra.gmra.mxu3 %vm142_vm0, %v87_v16  ;;  %706 = vmatmul.msk.bf16.vlgmr.msra.gmra.mxu1 %vm142_vm0, %v86_v23  ;;  %v98_v34 = vpack.c.bf16 %v93_v33, %v92_v32  ;;  %v76_v35 = vld [vmem:[%s1156_s0] sm:$0xff]  ;;  %v77_v36 = vld [vmem:[%s1156_s0 + $0x8] sm:$0xff]  ;;  %v79_v39 = vld [vmem:[%s1156_s0 + $0x18] sm:$0xff] }
   0xa   :  { %227 = vmatpush.bf16.msrb.mxu3 %v889_v20  ;;  %v84_v37 = vpack.c.bf16 %v77_v36, %v76_v35  ;;  %v85_v40 = vpack.c.bf16 %v79_v39, %v78_v38  ;;  %v62_v49 = vld [vmem:[%s1160_s7 + $0x10] sm:$0xff]  ;;  %v63_v50 = vld [vmem:[%s1160_s7 + $0x18] sm:$0xff]  ;;  %v60_v53 = vld [vmem:[%s1160_s7] sm:$0xff] }
   0xb   :  { %700 = vmatmul.msk.bf16.vlgmr.msra.gmra.mxu0 %vm100_vm1, %v96_v18  ;;  %703 = vmatmul.msk.bf16.vlgmr.msra.gmra.mxu2 %vm100_vm1, %v99_v19  ;;  %v957_v51 = vpack.c.bf16 %v63_v50, %v62_v49  ;;  %v61_v54 = vld [vmem:[%s1160_s7 + $0x8] sm:$0xff]  ;;  %v68_v60 = vld [vmem:[%s1161_s8 + $0x10] sm:$0xff]  ;;  %v69_v61 = vld [vmem:[%s1161_s8 + $0x18] sm:$0xff] }
   0xc   :  { %162 = vmatpush.bf16.msrb.mxu0 %v46_v10  ;;  %208 = vmatpush.bf16.msrb.mxu2 %v889_v20  ;;  %v969_v55 = vpack.c.bf16 %v61_v54, %v60_v53  ;;  %v982_v62 = vpack.c.bf16 %v69_v61, %v68_v60  ;;  %v66_v0 = vld [vmem:[%s1161_s8] sm:$0xff]  ;;  %v67_v1 = vld [vmem:[%s1161_s8 + $0x8] sm:$0xff] }
   0xd   :  { %346 = vmatpush.bf16.msrb.mxu1 %v957_v51  ;;  %v996_v2 = vpack.c.bf16 %v67_v1, %v66_v0  ;;  %v1005_v5 = vld [vmem:[%s1159_s6] ss:$0 sm:$0xff]  ;;  %v708_v10 = vld [vmem:[%s1158_s2 + $0x8] sm:$0xff] }
   0xe   :  { %228 = vmatpush.bf16.msrb.mxu3 %v909_v26  ;;  %v249_v11 = vpack.c.bf16 %v708_v10, %v708_v10  ;;  %v1027_v24 = vld [vmem:[%s1162_s9] ss:$0 sm:$0xff] }
  0x10   :  { %209 = vmatpush.bf16.msrb.mxu2 %v909_v26  ;;  %363 = vmatpush.bf16.msra.mxu0 %v982_v62 }
  0x11   :  { %347 = vmatpush.bf16.msrb.mxu1 %v969_v55 }
  0x12   :  { %259 = vmatpush.bf16.msra.mxu3 %v982_v62 }
  0x14   :  { %242 = vmatpush.bf16.msra.mxu2 %v957_v51  ;;  %364 = vmatpush.bf16.msra.mxu0 %v996_v2 }
  0x15   :  { %415 = vmatpush.bf16.msra.mxu1 %v982_v62 }
  0x16   :  { %260 = vmatpush.bf16.msra.mxu3 %v996_v2 }
  0x18   :  { %243 = vmatpush.bf16.msra.mxu2 %v969_v55 }
  0x19   :  { %416 = vmatpush.bf16.msra.mxu1 %v996_v2 }
  0x1b   :  { %701 = vmatmul.msk.bf16.gmra.mxu0 %vm100_vm1, %v97_v30  ;;  %709 = vmatmul.msk.bf16.vlgmr.msrb.gmra.mxu2 %vm100_vm1, %v198_v31 }
  0x1c   :  { %279 = vmatpush.bf16.msrb.mxu2 %v889_v20 }
  0x20   :  { %280 = vmatpush.bf16.msrb.mxu2 %v909_v26 }
  0x2b   :  { %702 = vmatmul.msk.bf16.gmra.mxu0 %vm100_vm1, %v98_v34 }
  0x3b   :  { %704 = vmatmul.msk.bf16.vlgmr.msrb.gmra.mxu0 %vm142_vm0, %v84_v37 }
  0x3c   :  { %435 = vmatpush.bf16.msrb.mxu0 %v889_v20 }
  0x40   :  { %436 = vmatpush.bf16.msrb.mxu0 %v909_v26 }
  0x4b   :  { %705 = vmatmul.msk.bf16.gmra.mxu0 %vm142_vm0, %v85_v40 }
  0x86   :  { %v174_v56 = vpop.f32.mrf.mxu1 }
  0x88   :  { %v122_v41 = vpop.f32.mrf.mxu0 }
  0x8c   :  { %v179_v43 = vpop.f32.mrf.mxu3 }
  0x8e   :  { %v137_v42 = vpop.f32.mrf.mxu2  ;;  %v176_v50 = vpop.f32.mrf.mxu1 }
  0x8f   :  { %v945_v44 = vadd.f32 %v179_v43, %v137_v42 }
  0x90   :  { %v124_v45 = vpop.f32.mrf.mxu0 }
  0x94   :  { %v1021_v12 = vpop.f32.mrf.mxu3 }
  0x96   :  { %v947_v46 = vpop.f32.mrf.mxu2 }
  0x98   :  { %v949_v47 = vpop.f32.mrf.mxu0 }
  0x9e   :  { %v211_v48 = vpop.f32.mrf.mxu2 }
  0xa0   :  { %v959_v52 = vpop.f32.mrf.mxu0 }
  0xa6   :  { %v213_v57 = vpop.f32.mrf.mxu2 }
  0xa8   :  { %v132_v58 = vpop.f32.mrf.mxu0 }
  0xa9   :  { %v974_v59 = vadd.f32 %v174_v56, %v132_v58 }
  0xab   :  { %v191_v10 = vadd.f32 %v1005_v5, %v974_v59 }
  0xb0   :  { %v988_v63 = vpop.f32.mrf.mxu0 }
  0xb8   :  { %v164_v3 = vpop.f32.mrf.mxu0 }
  0xb9   :  { %v165_v4 = vadd.f32 %v164_v3, %v122_v41 }
  0xbb   :  { %v187_v6 = vadd.f32 %v1005_v5, %v165_v4 }
  0xbd   :  { %v215_v7 = vadd.f32 %v211_v48, %v187_v6 }
  0xbf   :  { %745 = vtanh.f32 %v215_v7 }
  0xc0   :  { %v166_v13 = vpop.f32.mrf.mxu0 }
  0xc1   :  { %v167_v14 = vadd.f32 %v166_v13, %v124_v45 }
  0xc3   :  { %v188_v15 = vadd.f32 %v1005_v5, %v167_v14 }
  0xc5   :  { %v746_v8 = vpop.eup %745 }
  0xc6   :  { %v217_v9 = vpack.c.bf16 %v746_v8, %v746_v8 }
  0xc8   :  { %710 = vmatmul.msk.bf16.vlgmr.msrb.gmra.mxu3 %vm100_vm1, %v217_v9  ;;  %711 = vmatmul.msk.bf16.vlgmr.msra.gmra.mxu2 %vm100_vm1, %v217_v9  ;;  %v169_v32 = vpop.f32.mrf.mxu0 }
  0xc9   :  { %294 = vmatpush.bf16.msrb.mxu3 %v957_v51  ;;  %311 = vmatpush.bf16.msra.mxu2 %v982_v62  ;;  %v170_v33 = vadd.f32 %v169_v32, %v949_v47 }
  0xcb   :  { %v189_v34 = vadd.f32 %v1005_v5, %v170_v33 }
  0xcd   :  { %295 = vmatpush.bf16.msrb.mxu3 %v969_v55  ;;  %312 = vmatpush.bf16.msra.mxu2 %v996_v2 }
  0xd0   :  { %v171_v53 = vpop.f32.mrf.mxu0 }
  0xd1   :  { %v172_v56 = vadd.f32 %v171_v53, %v959_v52 }
  0xd3   :  { %v190_v57 = vadd.f32 %v1005_v5, %v172_v56 }
  0xd8   :  { %712 = vmatmul.msk.bf16.vlgmr.msra.gmra.mxu3 %vm100_vm1, %v249_v11 }
  0xd9   :  { %331 = vmatpush.bf16.msra.mxu3 %v889_v20 }
  0xdd   :  { %332 = vmatpush.bf16.msra.mxu3 %v909_v26 }
 0x14b   :  { %v230_v16 = vpop.f32.mrf.mxu3  ;;  %v245_v17 = vpop.f32.mrf.mxu2 }
 0x14c   :  { %v234_v18 = vadd.f32 %v230_v16, %v188_v15  ;;  %v246_v25 = vadd.f32 %v1027_v24, %v245_v17 }
 0x14e   :  { %747 = vtanh.f32 %v234_v18 }
 0x153   :  { %v232_v19 = vpop.f32.mrf.mxu3  ;;  %v247_v21 = vpop.f32.mrf.mxu2 }
 0x154   :  { %v748_v22 = vpop.eup %747 }
 0x155   :  { %v269_v23 = vpack.c.bf16 %v748_v22, %v748_v22 }
 0x157   :  { %713 = vmatmul.msk.bf16.vlgmr.msrb.gmra.mxu2 %vm100_vm1, %v269_v23  ;;  %714 = vmatmul.msk.bf16.vlgmr.msrb.gmra.mxu3 %vm100_vm1, %v269_v23  ;;  %v177_v23 = vadd.f32 %v176_v50, %v988_v63 }
 0x158   :  { %383 = vmatpush.bf16.msrb.mxu2 %v889_v20  ;;  %398 = vmatpush.bf16.msrb.mxu3 %v957_v51 }
 0x15b   :  { %v262_v27 = vpop.f32.mrf.mxu3 }
 0x15c   :  { %v266_v28 = vadd.f32 %v262_v27, %v246_v25  ;;  %384 = vmatpush.bf16.msrb.mxu2 %v909_v26  ;;  %399 = vmatpush.bf16.msrb.mxu3 %v969_v55  ;;  %v192_v25 = vadd.f32 %v1005_v5, %v177_v23 }
 0x15e   :  { %749 = vtanh.f32 %v266_v28 }
 0x163   :  { %v264_v29 = vpop.f32.mrf.mxu3 }
 0x164   :  { %v750_v30 = vpop.eup %749 }
 0x165   :  { %268 = vst.msk [vmem:[#allocation2] sm:$0xff] %vm100_vm1, %v750_v30  ;;  %v301_v31 = vpack.c.bf16 %v750_v30, %v750_v30 }
 0x167   :  { %715 = vmatmul.msk.bf16.vlgmr.msra.gmra.mxu2 %vm100_vm1, %v301_v31 }
 0x168   :  { %450 = vmatpush.bf16.msra.mxu2 %v957_v51 }
 0x16c   :  { %451 = vmatpush.bf16.msra.mxu2 %v969_v55 }
 0x1da   :  { %v282_v35 = vpop.f32.mrf.mxu2  ;;  %v297_v36 = vpop.f32.mrf.mxu3 }
 0x1db   :  { %v286_v37 = vadd.f32 %v282_v35, %v189_v34  ;;  %v298_v42 = vadd.f32 %v1027_v24, %v297_v36  ;;  %v635_v35 = vld [vmem:[%s1163_s10 + $0x10] sm:$0xff]  ;;  %v636_v36 = vld [vmem:[%s1163_s10 + $0x18] sm:$0xff] }
 0x1dd   :  { %751 = vtanh.f32 %v286_v37  ;;  %v638_v37 = vpack.c.bf16 %v636_v36, %v635_v35 }
 0x1e2   :  { %v284_v38 = vpop.f32.mrf.mxu2  ;;  %v299_v39 = vpop.f32.mrf.mxu3 }
 0x1e3   :  { %v752_v40 = vpop.eup %751  ;;  %v633_v38 = vld [vmem:[%s1163_s10] sm:$0xff]  ;;  %v634_v39 = vld [vmem:[%s1163_s10 + $0x8] sm:$0xff] }
 0x1e4   :  { %v321_v41 = vpack.c.bf16 %v752_v40, %v752_v40  ;;  %v637_v40 = vpack.c.bf16 %v634_v39, %v633_v38 }
 0x1e6   :  { %716 = vmatmul.msk.bf16.vlgmr.msra.gmra.mxu3 %vm100_vm1, %v321_v41  ;;  %717 = vmatmul.msk.bf16.vlgmr.msrb.gmra.mxu1 %vm100_vm1, %v321_v41  ;;  %v193_v41 = vadd.f32 %v1005_v5, %v945_v44 }
 0x1e7   :  { %467 = vmatpush.bf16.msra.mxu3 %v982_v62  ;;  %487 = vmatpush.bf16.msrb.mxu1 %v889_v20 }
 0x1ea   :  { %v314_v43 = vpop.f32.mrf.mxu2 }
 0x1eb   :  { %v318_v45 = vadd.f32 %v314_v43, %v298_v42  ;;  %468 = vmatpush.bf16.msra.mxu3 %v996_v2  ;;  %488 = vmatpush.bf16.msrb.mxu1 %v909_v26 }
 0x1ed   :  { %753 = vtanh.f32 %v318_v45 }
 0x1f2   :  { %v316_v47 = vpop.f32.mrf.mxu2 }
 0x1f3   :  { %v754_v48 = vpop.eup %753 }
 0x1f4   :  { %320 = vst.msk [vmem:[#allocation2 + $0x8] sm:$0xff] %vm100_vm1, %v754_v48  ;;  %v353_v49 = vpack.c.bf16 %v754_v48, %v754_v48 }
 0x1f6   :  { %718 = vmatmul.msk.bf16.vlgmr.msra.gmra.mxu0 %vm100_vm1, %v353_v49 }
 0x1f7   :  { %502 = vmatpush.bf16.msra.mxu0 %v957_v51 }
 0x1fb   :  { %503 = vmatpush.bf16.msra.mxu0 %v969_v55 }
 0x263   :  { %v349_v54 = vpop.f32.mrf.mxu1 }
 0x264   :  { %v350_v3 = vadd.f32 %v1027_v24, %v349_v54 }
 0x269   :  { %v334_v58 = vpop.f32.mrf.mxu3 }
 0x26a   :  { %v338_v60 = vadd.f32 %v334_v58, %v190_v57  ;;  %v622_v57 = vld [vmem:[#allocation2 + $0x8] sm:$0xff] }
 0x26b   :  { %v351_v61 = vpop.f32.mrf.mxu1 }
 0x26c   :  { %755 = vtanh.f32 %v338_v60  ;;  %v621_v60 = vld [vmem:[#allocation2] sm:$0xff] }
 0x271   :  { %v336_v0 = vpop.f32.mrf.mxu3 }
 0x272   :  { %v756_v1 = vpop.eup %755  ;;  %v629_v0 = vpack.c.bf16 %v622_v57, %v621_v60 }
 0x273   :  { %v373_v4 = vpack.c.bf16 %v756_v1, %v756_v1  ;;  %v366_v6 = vpop.f32.mrf.mxu0 }
 0x274   :  { %v370_v7 = vadd.f32 %v366_v6, %v350_v3 }
 0x275   :  { %719 = vmatmul.msk.bf16.vlgmr.msrb.gmra.mxu2 %vm100_vm1, %v373_v4  ;;  %720 = vmatmul.msk.bf16.vlgmr.msrb.gmra.mxu3 %vm100_vm1, %v373_v4 }
 0x276   :  { %757 = vtanh.f32 %v370_v7  ;;  %519 = vmatpush.bf16.msrb.mxu2 %v982_v62  ;;  %539 = vmatpush.bf16.msrb.mxu3 %v889_v20 }
 0x27a   :  { %520 = vmatpush.bf16.msrb.mxu2 %v996_v2  ;;  %540 = vmatpush.bf16.msrb.mxu3 %v909_v26 }
 0x27b   :  { %v368_v52 = vpop.f32.mrf.mxu0 }
 0x27c   :  { %v758_v8 = vpop.eup %757 }
 0x27d   :  { %372 = vst.msk [vmem:[#allocation2 + $0x10] sm:$0xff] %vm100_vm1, %v758_v8  ;;  %v405_v9 = vpack.c.bf16 %v758_v8, %v758_v8 }
 0x27f   :  { %721 = vmatmul.msk.bf16.vlgmr.msra.gmra.mxu1 %vm100_vm1, %v405_v9  ;;  %v182_v9 = vadd.f32 %v1021_v12, %v947_v46 }
 0x280   :  { %554 = vmatpush.bf16.msra.mxu1 %v957_v51 }
 0x284   :  { %555 = vmatpush.bf16.msra.mxu1 %v969_v55  ;;  %v623_v3 = vld [vmem:[#allocation2 + $0x10] sm:$0xff] }
 0x2f8   :  { %v386_v11 = vpop.f32.mrf.mxu2  ;;  %v401_v20 = vpop.f32.mrf.mxu3 }
 0x2f9   :  { %v390_v13 = vadd.f32 %v386_v11, %v191_v10  ;;  %v402_v26 = vadd.f32 %v1027_v24, %v401_v20  ;;  %v194_v10 = vadd.f32 %v1005_v5, %v182_v9 }
 0x2fb   :  { %759 = vtanh.f32 %v390_v13 }
 0x2fc   :  { %v418_v14 = vpop.f32.mrf.mxu1 }
 0x2fd   :  { %v422_v15 = vadd.f32 %v418_v14, %v402_v26  ;;  %v744_v26 = vld [vmem:[%s1164_s11] ss:$0 sm:$0xff] }
 0x2ff   :  { %761 = vtanh.f32 %v422_v15 }
 0x300   :  { %v388_v16 = vpop.f32.mrf.mxu2  ;;  %v403_v17 = vpop.f32.mrf.mxu3 }
 0x301   :  { %v760_v18 = vpop.eup %759 }
 0x302   :  { %v425_v19 = vpack.c.bf16 %v760_v18, %v760_v18 }
 0x304   :  { %v420_v21 = vpop.f32.mrf.mxu1  ;;  %722 = vmatmul.msk.bf16.vlgmr.msrb.gmra.mxu0 %vm100_vm1, %v425_v19  ;;  %723 = vmatmul.msk.bf16.vlgmr.msra.gmra.mxu2 %vm100_vm1, %v425_v19 }
 0x305   :  { %v762_v22 = vpop.eup %761  ;;  %571 = vmatpush.bf16.msrb.mxu0 %v982_v62  ;;  %591 = vmatpush.bf16.msra.mxu2 %v957_v51 }
 0x306   :  { %424 = vst.msk [vmem:[#allocation2 + $0x18] sm:$0xff] %vm100_vm1, %v762_v22  ;;  %v457_v59 = vpack.c.bf16 %v762_v22, %v762_v22 }
 0x308   :  { %724 = vmatmul.msk.bf16.vlgmr.msra.gmra.mxu3 %vm100_vm1, %v457_v59 }
 0x309   :  { %572 = vmatpush.bf16.msrb.mxu0 %v996_v2  ;;  %608 = vmatpush.bf16.msra.mxu3 %v982_v62 }
 0x30a   :  { %592 = vmatpush.bf16.msra.mxu2 %v969_v55 }
 0x30d   :  { %609 = vmatpush.bf16.msra.mxu3 %v996_v2  ;;  %v624_v1 = vld [vmem:[#allocation2 + $0x18] sm:$0xff] }
 0x30e   :  { %v630_v4 = vpack.c.bf16 %v624_v1, %v623_v3 }
 0x381   :  { %v438_v27 = vpop.f32.mrf.mxu0 }
 0x382   :  { %v442_v28 = vadd.f32 %v438_v27, %v192_v25 }
 0x384   :  { %763 = vtanh.f32 %v442_v28 }
 0x387   :  { %v453_v51 = vpop.f32.mrf.mxu2 }
 0x388   :  { %v454_v31 = vadd.f32 %v1027_v24, %v453_v51 }
 0x389   :  { %v440_v29 = vpop.f32.mrf.mxu0 }
 0x38a   :  { %v764_v30 = vpop.eup %763 }
 0x38b   :  { %v477_v32 = vpack.c.bf16 %v764_v30, %v764_v30  ;;  %v470_v33 = vpop.f32.mrf.mxu3 }
 0x38c   :  { %v474_v34 = vadd.f32 %v470_v33, %v454_v31 }
 0x38d   :  { %725 = vmatmul.msk.bf16.vlgmr.msrb.gmra.mxu1 %vm100_vm1, %v477_v32  ;;  %726 = vmatmul.msk.bf16.vlgmr.msra.gmra.mxu0 %vm100_vm1, %v477_v32 }
 0x38e   :  { %765 = vtanh.f32 %v474_v34  ;;  %661 = vmatpush.bf16.msrb.mxu1 %v638_v37 }
 0x38f   :  { %v455_v55 = vpop.f32.mrf.mxu2 }
 0x392   :  { %662 = vmatpush.bf16.msrb.mxu1 %v637_v40 }
 0x393   :  { %v472_v62 = vpop.f32.mrf.mxu3 }
 0x394   :  { %v766_v63 = vpop.eup %765 }
 0x395   :  { %476 = vst.msk [vmem:[#allocation2 + $0x20] sm:$0xff] %vm100_vm1, %v766_v63  ;;  %v509_v2 = vpack.c.bf16 %v766_v63, %v766_v63 }
 0x397   :  { %727 = vmatmul.msk.bf16.vlgmr.msrb.gmra.mxu2 %vm100_vm1, %v509_v2 }
 0x39c   :  { %v625_v7 = vld [vmem:[#allocation2 + $0x20] sm:$0xff] }
 0x40a   :  { %v490_v42 = vpop.f32.mrf.mxu1  ;;  %v505_v43 = vpop.f32.mrf.mxu0 }
 0x40b   :  { %v494_v45 = vadd.f32 %v490_v42, %v193_v41  ;;  %v506_v53 = vadd.f32 %v1027_v24, %v505_v43 }
 0x40d   :  { %767 = vtanh.f32 %v494_v45 }
 0x412   :  { %v492_v47 = vpop.f32.mrf.mxu1  ;;  %v507_v48 = vpop.f32.mrf.mxu0 }
 0x413   :  { %v768_v49 = vpop.eup %767 }
 0x414   :  { %v529_v50 = vpack.c.bf16 %v768_v49, %v768_v49 }
 0x416   :  { %728 = vmatmul.msk.bf16.vlgmr.msrb.gmra.mxu3 %vm100_vm1, %v529_v50  ;;  %729 = vmatmul.msk.bf16.vlgmr.msra.gmra.mxu1 %vm100_vm1, %v529_v50 }
 0x41a   :  { %v522_v54 = vpop.f32.mrf.mxu2 }
 0x41b   :  { %v526_v56 = vadd.f32 %v522_v54, %v506_v53 }
 0x41d   :  { %769 = vtanh.f32 %v526_v56 }
 0x422   :  { %v524_v58 = vpop.f32.mrf.mxu2 }
 0x423   :  { %v770_v44 = vpop.eup %769 }
 0x424   :  { %528 = vst.msk [vmem:[#allocation2 + $0x28] sm:$0xff] %vm100_vm1, %v770_v44  ;;  %v561_v61 = vpack.c.bf16 %v770_v44, %v770_v44 }
 0x426   :  { %730 = vmatmul.msk.bf16.vlgmr.msrb.gmra.mxu0 %vm100_vm1, %v561_v61  ;;  %734 = vmatmul.msk.bf16.vlgmr.msrb.gmra.mxu1 %vm100_vm1, %v629_v0 }
 0x42b   :  { %v626_v6 = vld [vmem:[#allocation2 + $0x28] sm:$0xff] }
 0x42c   :  { %v631_v52 = vpack.c.bf16 %v626_v6, %v625_v7 }
 0x436   :  { %735 = vmatmul.msk.bf16.gmra.mxu1 %vm100_vm1, %v630_v4 }
 0x446   :  { %736 = vmatmul.msk.bf16.gmra.mxu1 %vm100_vm1, %v631_v52 }
 0x493   :  { %v557_v8 = vpop.f32.mrf.mxu1 }
 0x494   :  { %v558_v16 = vadd.f32 %v1027_v24, %v557_v8 }
 0x499   :  { %v542_v11 = vpop.f32.mrf.mxu3 }
 0x49a   :  { %v546_v20 = vadd.f32 %v542_v11, %v194_v10 }
 0x49b   :  { %v559_v13 = vpop.f32.mrf.mxu1 }
 0x49c   :  { %771 = vtanh.f32 %v546_v20 }
 0x4a1   :  { %v544_v14 = vpop.f32.mrf.mxu3 }
 0x4a2   :  { %v772_v15 = vpop.eup %771 }
 0x4a3   :  { %v581_v17 = vpack.c.bf16 %v772_v15, %v772_v15  ;;  %618 = vst.msk [vmem:[%s1165_s13] sm:$0xff] %vm100_vm1, %v772_v15  ;;  %v574_v46 = vpop.f32.mrf.mxu0  ;;  %v664_v5 = vpop.f32.mrf.mxu1 }
 0x4a4   :  { %v578_v12 = vadd.f32 %v574_v46, %v558_v16  ;;  %v665_v18 = vadd.f32 %v744_v26, %v664_v5 }
 0x4a5   :  { %731 = vmatmul.msk.bf16.vlgmr.msra.gmra.mxu2 %vm100_vm1, %v581_v17 }
 0x4a6   :  { %773 = vtanh.f32 %v578_v12  ;;  %684 = vst [vmem:[%s1166_s12] sm:$0xff] %v665_v18 }
 0x4ab   :  { %v576_v19 = vpop.f32.mrf.mxu0  ;;  %v666_v21 = vpop.f32.mrf.mxu1 }
 0x4ac   :  { %v774_v22 = vpop.eup %773  ;;  %v667_v59 = vadd.f32 %v744_v26, %v666_v21 }
 0x4ad   :  { %580 = vst.msk [vmem:[#allocation2 + $0x30] sm:$0xff] %vm100_vm1, %v774_v22  ;;  %v598_v23 = vpack.c.bf16 %v774_v22, %v774_v22 }
 0x4ae   :  { %685 = vst [vmem:[%s1166_s12 + $0x8] sm:$0xff] %v667_v59 }
 0x4af   :  { %732 = vmatmul.msk.bf16.vlgmr.msra.gmra.mxu3 %vm100_vm1, %v598_v23 }
 0x4b3   :  { %v669_v25 = vpop.f32.mrf.mxu1 }
 0x4b4   :  { %v670_v27 = vadd.f32 %v744_v26, %v669_v25  ;;  %v627_v36 = vld [vmem:[#allocation2 + $0x30] sm:$0xff] }
 0x4b6   :  { %686 = vst [vmem:[%s1166_s12 + $0x10] sm:$0xff] %v670_v27 }
 0x4bb   :  { %v671_v28 = vpop.f32.mrf.mxu1 }
 0x4bc   :  { %v672_v51 = vadd.f32 %v744_v26, %v671_v28 }
 0x4be   :  { %687 = vst [vmem:[%s1166_s12 + $0x18] sm:$0xff] %v672_v51 }
 0x4c3   :  { %v674_v29 = vpop.f32.mrf.mxu1 }
 0x4c4   :  { %v675_v30 = vadd.f32 %v744_v26, %v674_v29 }
 0x4c6   :  { %688 = vst [vmem:[%s1166_s12 + $0x20] sm:$0xff] %v675_v30 }
 0x4cb   :  { %v676_v31 = vpop.f32.mrf.mxu1 }
 0x4cc   :  { %v677_v32 = vadd.f32 %v744_v26, %v676_v31 }
 0x4ce   :  { %689 = vst [vmem:[%s1166_s12 + $0x28] sm:$0xff] %v677_v32 }
 0x528   :  { %v594_v33 = vpop.f32.mrf.mxu2 }
 0x529   :  { %v595_v55 = vadd.f32 %v1027_v24, %v594_v33 }
 0x530   :  { %v596_v34 = vpop.f32.mrf.mxu2 }
 0x532   :  { %v611_v62 = vpop.f32.mrf.mxu3 }
 0x533   :  { %v615_v63 = vadd.f32 %v611_v62, %v595_v55 }
 0x535   :  { %775 = vtanh.f32 %v615_v63 }
 0x53a   :  { %v613_v2 = vpop.f32.mrf.mxu3 }
 0x53b   :  { %v776_v35 = vpop.eup %775 }
 0x53c   :  { %617 = vst.msk [vmem:[#allocation2 + $0x38] sm:$0xff] %vm100_vm1, %v776_v35 }
 0x53d   :  { %733 = vst.msk [vmem:[%s1165_s13 + $0x8] sm:$0xff] %vm100_vm1, %v776_v35 }
 0x543   :  { %v628_v37 = vld [vmem:[#allocation2 + $0x38] sm:$0xff] }
 0x544   :  { %v632_v38 = vpack.c.bf16 %v628_v37, %v627_v36 }
 0x546   :  { %737 = vmatmul.msk.bf16.gmra.mxu1 %vm100_vm1, %v632_v38 }
 0x5c3   :  { %v679_v39 = vpop.f32.mrf.mxu1 }
 0x5c4   :  { %v680_v40 = vadd.f32 %v744_v26, %v679_v39 }
 0x5c6   :  { %690 = vst [vmem:[%s1166_s12 + $0x30] sm:$0xff] %v680_v40 }
 0x5cb   :  { %v681_v24 = vpop.f32.mrf.mxu1 }
 0x5cc   :  { %v682_v41 = vadd.f32 %v744_v26, %v681_v24 }
 0x5ce   :  { %691 = vst [vmem:[%s1166_s12 + $0x38] sm:$0xff] %v682_v41 }

</bundles_post_ra>
